<compile_context>
chip_gen: v7x
topology: tpu7x:2x2x1
jax: 0.10.0
libtpu: 0.0.40
codegen_flags: <defaults>
</compile_context>

<pallas_src>
import functools

import jax
import jax.numpy as jnp
from jax.experimental import pallas as pl
from jax.experimental.pallas import tpu as pltpu

EPS = 1e-5
MOMENTUM = 0.9
LANE = 128
SUBLANE = 8
TILE_BYTE_BUDGET = 2 << 20   # ~2 MiB per x tile (double-buffered by Pallas)


# ----------------------------- kernels --------------------------------------
def _bn_eval_kernel(x_ref, w_ref, b_ref, rm_ref, rv_ref, y_ref):
    # Fold eval-mode BN into one affine per feature tile: y = x * scale + shift
    scale = w_ref[...] * jax.lax.rsqrt(rv_ref[...] + EPS)   # [1, blkF]
    shift = b_ref[...] - rm_ref[...] * scale                # [1, blkF]
    y_ref[...] = x_ref[...] * scale + shift


def _bn_train_kernel(x_ref, w_ref, b_ref, rm_ref, rv_ref,
                     y_ref, new_rm_ref, new_rv_ref):
    x = x_ref[...]                                          # [B, blkF], full batch
    n = jnp.float32(x_ref.shape[0])                         # true (unpadded) batch
    mean = jnp.sum(x, axis=0, keepdims=True) / n            # [1, blkF]
    centered = x - mean
    # torch.var default is unbiased (divide by B - 1).
    var = jnp.sum(centered * centered, axis=0, keepdims=True) / (n - 1.0)
    inv = jax.lax.rsqrt(var + EPS)
    y_ref[...] = centered * (inv * w_ref[...]) + b_ref[...]
    new_rm_ref[...] = rm_ref[...] * MOMENTUM + mean * (1.0 - MOMENTUM)
    new_rv_ref[...] = rv_ref[...] * MOMENTUM + var * (1.0 - MOMENTUM)


# --------------------------- tiling helpers ----------------------------------
def _round_up(n, m):
    return (n + m - 1) // m * m


def _pick_feature_block(fp, rows, budget=TILE_BYTE_BUDGET):
    # fp is a multiple of 128; pick the biggest tile dividing it whose
    # [rows, blk_f] fp32 slab fits the per-tile budget.
    for cand in (1024, 512, 256, 128):
        if fp % cand == 0 and rows * cand * 4 <= budget:
            return cand
    return 128   # fp is always a multiple of 128


def _pick_batch_block(bp, blk_f, budget=TILE_BYTE_BUDGET):
    # bp is a multiple of 8; largest multiple of 8 dividing bp, capped at 512
    # and by the per-tile byte budget.
    cap = max(SUBLANE, min(bp, 512, budget // (blk_f * 4)))
    blk_b = cap - (cap % SUBLANE)
    while bp % blk_b:
        blk_b -= SUBLANE
    return blk_b


# ------------------------------- wrapper -------------------------------------
@functools.partial(jax.jit, static_argnames=("training",))
def batchnorm1d(x, weight, bias, running_mean, running_var, *, training=False):
    """Functional equivalent of BatchNorm1d.forward.

    x: [B, F] float32; weight/bias/running_mean/running_var: [F] float32.
    eval : returns y [B, F]
    train: returns (y, new_running_mean, new_running_var)
    """
    B, F = x.shape
    Fp = _round_up(F, LANE)

    def prep(v, pad_value=0.0):
        v = v.reshape(1, F).astype(jnp.float32)
        if Fp != F:
            v = jnp.pad(v, ((0, 0), (0, Fp - F)), constant_values=pad_value)
        return v

    w = prep(weight)
    b = prep(bias)
    rm = prep(running_mean)
    rv = prep(running_var, pad_value=1.0)    # keep rsqrt on padded lanes benign

    if Fp != F:
        x = jnp.pad(x, ((0, 0), (0, Fp - F)))

    if not training:
        # ---- eval: tile features (outer) x batch (inner).  Param vectors keep
        #      the same block index across the inner batch loop -> no re-DMA.
        Bp = _round_up(B, SUBLANE)
        xp = jnp.pad(x, ((0, Bp - B), (0, 0))) if Bp != B else x
        blk_f = _pick_feature_block(Fp, rows=SUBLANE)          # lane-side tile
        blk_b = _pick_batch_block(Bp, blk_f)
        grid = (Fp // blk_f, Bp // blk_b)                      # (feat, batch)
        x_spec = pl.BlockSpec((blk_b, blk_f), lambda j, i: (i, j))
        vec_spec = pl.BlockSpec((1, blk_f), lambda j, i: (0, j))
        y = pl.pallas_call(
            _bn_eval_kernel,
            out_shape=jax.ShapeDtypeStruct((Bp, Fp), jnp.float32),
            grid_spec=pl.GridSpec(
                grid=grid,
                in_specs=[x_spec, vec_spec, vec_spec, vec_spec, vec_spec],
                out_specs=x_spec,
            ),
            compiler_params=pltpu.CompilerParams(
                dimension_semantics=("parallel", "parallel"),
            ),
        )(xp, w, b, rm, rv)
        return y[:B, :F]

    # ---- training: tile features only; per-feature batch stats need no
    #      cross-tile reduction, so the single grid axis is parallel ---------
    blk_f = _pick_feature_block(Fp, rows=B)
    grid = (Fp // blk_f,)
    x_spec = pl.BlockSpec((B, blk_f), lambda j: (0, j))
    vec_spec = pl.BlockSpec((1, blk_f), lambda j: (0, j))
    y, new_rm, new_rv = pl.pallas_call(
        _bn_train_kernel,
        out_shape=(
            jax.ShapeDtypeStruct((B, Fp), jnp.float32),
            jax.ShapeDtypeStruct((1, Fp), jnp.float32),
            jax.ShapeDtypeStruct((1, Fp), jnp.float32),
        ),
        grid_spec=pl.GridSpec(
            grid=grid,
            in_specs=[x_spec, vec_spec, vec_spec, vec_spec, vec_spec],
            out_specs=(x_spec, vec_spec, vec_spec),
        ),
        compiler_params=pltpu.CompilerParams(
            dimension_semantics=("parallel",),
        ),
    )(x, w, b, rm, rv)
    return y[:B, :F], new_rm[0, :F], new_rv[0, :F]


# -------------------------- pure-JAX references ------------------------------
def _ref_eval(x, w, b, rm, rv):
    return (x - rm) / jnp.sqrt(rv + EPS) * w + b


def _ref_train(x, w, b, rm, rv):
    mean = jnp.mean(x, axis=0, keepdims=True)
    var = jnp.var(x, axis=0, keepdims=True, ddof=1)   # torch.var default: unbiased
    y = (x - mean) / jnp.sqrt(var + EPS) * w + b
    new_rm = rm * MOMENTUM + mean[0] * (1.0 - MOMENTUM)
    new_rv = rv * MOMENTUM + var[0] * (1.0 - MOMENTUM)
    return y, new_rm, new_rv


if __name__ == "__main__":
    key = jax.random.PRNGKey(0)

    # Case 2 (F=200) exercises the lane-padding path (200 -> 256).
    for (B, F) in ((8, 256), (8, 200)):
        kx, kw, kb, km, kv, key = jax.random.split(key, 6)
        x = jax.random.normal(kx, (B, F), jnp.float32)
        weight = jax.random.uniform(kw, (F,), jnp.float32, 0.5, 1.5)
        bias = jax.random.uniform(kb, (F,), jnp.float32, -0.5, 0.5)
        running_mean = jax.random.normal(km, (F,), jnp.float32) * 0.1
        running_var = jax.random.uniform(kv, (F,), jnp.float32, 0.5, 2.0)

        # eval mode
        y_eval = batchnorm1d(x, weight, bias, running_mean, running_var,
                             training=False)
        y_eval = jax.block_until_ready(y_eval)
        y_ref = _ref_eval(x, weight, bias, running_mean, running_var)
        assert jnp.allclose(y_eval, y_ref, atol=1e-4, rtol=1e-4), "eval mismatch"

        # training mode (batch stats + running-buffer update)
        y_tr, new_rm, new_rv = batchnorm1d(
            x, weight, bias, running_mean, running_var, training=True)
        jax.block_until_ready((y_tr, new_rm, new_rv))
        y_ref, rm_ref, rv_ref = _ref_train(x, weight, bias,
                                           running_mean, running_var)
        assert jnp.allclose(y_tr, y_ref, atol=1e-4, rtol=1e-4), "train y mismatch"
        assert jnp.allclose(new_rm, rm_ref, atol=1e-5, rtol=1e-5), "running_mean mismatch"
        assert jnp.allclose(new_rv, rv_ref, atol=1e-5, rtol=1e-5), "running_var mismatch"

    print("KERNEL_OK")
</pallas_src>

<mosaic_0001>
module attributes {stable_mosaic.version = 11 : i64} {
  func.func @_bn_eval_kernel(%arg0: i32, %arg1: i32, %arg2: memref<8x256xf32, #tpu.memory_space<vmem>>, %arg3: memref<1x256xf32, #tpu.memory_space<vmem>>, %arg4: memref<1x256xf32, #tpu.memory_space<vmem>>, %arg5: memref<1x256xf32, #tpu.memory_space<vmem>>, %arg6: memref<1x256xf32, #tpu.memory_space<vmem>>, %arg7: memref<8x256xf32, #tpu.memory_space<vmem>>) attributes {dimension_semantics = [#tpu.dimension_semantics<parallel>, #tpu.dimension_semantics<parallel>], iteration_bounds = array<i64: 1, 1>, scalar_prefetch = 0 : i64, scratch_operands = 0 : i64, tpu.core_type = #tpu.core_type<tc>, window_params = [{transform_indices = @transform_0, window_bounds = array<i64: 8, 256>}, {transform_indices = @transform_1, window_bounds = array<i64: 1, 256>}, {transform_indices = @transform_2, window_bounds = array<i64: 1, 256>}, {transform_indices = @transform_3, window_bounds = array<i64: 1, 256>}, {transform_indices = @transform_4, window_bounds = array<i64: 1, 256>}, {transform_indices = @transform_5, window_bounds = array<i64: 8, 256>}]} {
    %c0 = arith.constant 0 : index
    %c0_0 = arith.constant 0 : index
    %0 = vector.load %arg3[%c0, %c0_0] : memref<1x256xf32, #tpu.memory_space<vmem>>, vector<1x256xf32>
    %c0_1 = arith.constant 0 : index
    %c0_2 = arith.constant 0 : index
    %1 = vector.load %arg6[%c0_1, %c0_2] : memref<1x256xf32, #tpu.memory_space<vmem>>, vector<1x256xf32>
    %cst = arith.constant 9.99999974E-6 : f32
    %2 = vector.broadcast %cst : f32 to vector<1x256xf32>
    %3 = arith.addf %1, %2 : vector<1x256xf32>
    %4 = math.rsqrt %3 : vector<1x256xf32>
    %5 = arith.mulf %0, %4 : vector<1x256xf32>
    %c0_3 = arith.constant 0 : index
    %c0_4 = arith.constant 0 : index
    %6 = vector.load %arg4[%c0_3, %c0_4] : memref<1x256xf32, #tpu.memory_space<vmem>>, vector<1x256xf32>
    %c0_5 = arith.constant 0 : index
    %c0_6 = arith.constant 0 : index
    %7 = vector.load %arg5[%c0_5, %c0_6] : memref<1x256xf32, #tpu.memory_space<vmem>>, vector<1x256xf32>
    %8 = arith.mulf %7, %5 : vector<1x256xf32>
    %9 = arith.subf %6, %8 : vector<1x256xf32>
    %c0_7 = arith.constant 0 : index
    %c0_8 = arith.constant 0 : index
    %10 = vector.load %arg2[%c0_7, %c0_8] : memref<8x256xf32, #tpu.memory_space<vmem>>, vector<8x256xf32>
    %11 = vector.broadcast %5 : vector<1x256xf32> to vector<8x256xf32>
    %12 = arith.mulf %10, %11 : vector<8x256xf32>
    %13 = vector.broadcast %9 : vector<1x256xf32> to vector<8x256xf32>
    %14 = arith.addf %12, %13 : vector<8x256xf32>
    %c0_9 = arith.constant 0 : index
    %c0_10 = arith.constant 0 : index
    %15 = vector.load %arg7[%c0_9, %c0_10] : memref<8x256xf32, #tpu.memory_space<vmem>>, vector<8x256xf32>
    tpu.vector_store %arg7[%c0_9, %c0_10], %14 {strides = array<i32>} : memref<8x256xf32, #tpu.memory_space<vmem>>, vector<8x256xf32>,
    return
  }
  func.func @transform_0(%arg0: i32, %arg1: i32) -> (i32, i32) {
    %c0_i32 = arith.constant 0 : i32
    return %arg1, %arg0 : i32, i32
  }
  func.func @transform_1(%arg0: i32, %arg1: i32) -> (i32, i32) {
    %c0_i32 = arith.constant 0 : i32
    %c0_i32_0 = arith.constant 0 : i32
    return %c0_i32, %arg0 : i32, i32
  }
  func.func @transform_2(%arg0: i32, %arg1: i32) -> (i32, i32) {
    %c0_i32 = arith.constant 0 : i32
    %c0_i32_0 = arith.constant 0 : i32
    return %c0_i32, %arg0 : i32, i32
  }
  func.func @transform_3(%arg0: i32, %arg1: i32) -> (i32, i32) {
    %c0_i32 = arith.constant 0 : i32
    %c0_i32_0 = arith.constant 0 : i32
    return %c0_i32, %arg0 : i32, i32
  }
  func.func @transform_4(%arg0: i32, %arg1: i32) -> (i32, i32) {
    %c0_i32 = arith.constant 0 : i32
    %c0_i32_0 = arith.constant 0 : i32
    return %c0_i32, %arg0 : i32, i32
  }
  func.func @transform_5(%arg0: i32, %arg1: i32) -> (i32, i32) {
    %c0_i32 = arith.constant 0 : i32
    return %arg1, %arg0 : i32, i32
  }
}

</mosaic_0001>

<bundles_post_ra>
// kernel: batchnorm1d.1
= control target key start
LH: loop header
LB: loop body
LE: loop exit
PB: predicated region body
PF: predicated region fallthrough
CT: control target
= control target key end

     0   :  { %10 = vsyncpa [#allocation3], 0  ;;  %s207_s0 = inlined_call_operand.hbm [shape: f32[8,256], index: 0, kind: input, shape index: {}]   ;;  %s208_s1 = inlined_call_operand.vmem [shape: f32[1,256], index: 1, kind: input, shape index: {}]   ;;  %s209_s2 = inlined_call_operand.vmem [shape: f32[1,256], index: 2, kind: input, shape index: {}]   ;;  %s210_s3 = inlined_call_operand.vmem [shape: f32[1,256], index: 3, kind: input, shape index: {}]   ;;  %s211_s4 = inlined_call_operand.vmem [shape: f32[1,256], index: 4, kind: input, shape index: {}]   ;;  %s212_s5 = inlined_call_operand.hbm [shape: f32[8,256], index: 5, kind: output, shape index: {}]  }
   0x1   :  { %11 = vsyncpa [#allocation4], 0  ;;  %s139_s18 = smov [#allocation2]   ;;  %s91_s22 = scalar_lea.hbm %s207_s0, 256 }
   0x2   :  { %s18_s19 = sshll.u32 %s139_s18, 4  ;;  %p92_p0 = scmp.ne.s32.totalorder %s207_s0, %s91_s22  ;;  %s19_s19 = int_to_ptr.vmem [resolvable:$true] %s18_s19 }
   0x3   :  { %p95_p1 = scmp.lt.u32.totalorder %s91_s22, %s207_s0 }
   0x5   :  { %p97_p2 = pnand %p95_p1, %p92_p0 }
   0x7   :  { %100 = shalt.err (!%p97_p2)
}
   0x8   :  { %s101_s27 = scalar_lea.vmem %s19_s19, 256  ;;  %p106_p4 = scmp.lt.s32.totalorder %s19_s19, %s19_s19 }
   0x9   :  { %p102_p3 = scmp.ne.s32.totalorder %s19_s19, %s101_s27  ;;  %p107_p5 = scmp.lt.s32.totalorder %s101_s27, %s101_s27 }
   0xb   :  { %p108_p6 = por %p107_p5, %p106_p4 }
   0xd   :  { %p109_p7 = pnand %p108_p6, %p102_p3 }
   0xf   :  { %112 = shalt.err (!%p109_p7)
}
  0x10   :  { %21 = dma.hbm_to_vmem [thread:$0]  %s207_s0, 256, %s19_s19, [#allocation3]  }
  0x11   :  { %135 = dma.done.wait [#allocation3], 256  }
  0x12   :  { %136 = vsyncadd [#allocation3], 4294967040  ;;  %v34_v0 = vld [vmem:[%s211_s4] sm:$0x3]  ;;  %v45_v2 = vlaneseq  ;;  %v43_v12 = vld [vmem:[#allocation2 + $0x8] sm:$0xff] }
  0x13   :  { %v35_v1 = vadd.f32 1e-05, %v34_v0  ;;  %v33_v4 = vld [vmem:[%s208_s1] sm:$0x3]  ;;  %s140_s1 = smov [#allocation5]  }
  0x14   :  { %v46_v3 = vshrl.u32 %v45_v2, 7  ;;  %v39_v8 = vld [vmem:[%s210_s3] sm:$0x3]  ;;  %s78_s4 = sshll.u32 %s140_s1, 4  ;;  %s79_s4 = int_to_ptr.vmem [resolvable:$true] %s78_s4 }
  0x15   :  { %89 = vrsqrt.f32 %v35_v1  ;;  %v38_v10 = vld [vmem:[%s209_s2] sm:$0x3]  ;;  %s113_s3 = scalar_lea.vmem %s79_s4, 256  ;;  %p118_p9 = scmp.lt.s32.totalorder %s79_s4, %s79_s4 }
  0x16   :  { %v47_v5 = vsub.s32 0, %v46_v3  ;;  %v51_v6 = vsub.s32 1, %v46_v3  ;;  %v42_v11 = vld [vmem:[#allocation2] sm:$0xff]  ;;  %p114_p8 = scmp.ne.s32.totalorder %s79_s4, %s113_s3  ;;  %p119_p10 = scmp.lt.s32.totalorder %s113_s3, %s113_s3 }
  0x18   :  { %p120_p11 = por %p119_p10, %p118_p9 }
  0x1a   :  { %p121_p12 = pnand %p120_p11, %p114_p8 }
  0x1f   :  { %v90_v7 = vpop.eup %89 }
  0x20   :  { %v37_v9 = vmul.f32 %v90_v7, %v33_v4 }
  0x22   :  { %v40_v13 = vmul.f32 %v39_v8, %v37_v9  ;;  %v48_v14 = vrot.slane %v37_v9, %v47_v5  ;;  %v52_v15 = vrot.slane %v37_v9, %v51_v6 }
  0x24   :  { %v41_v16 = vsub.f32 %v38_v10, %v40_v13  ;;  %v55_v17 = vmul.f32 %v48_v14, %v42_v11  ;;  %v56_v18 = vmul.f32 %v52_v15, %v43_v12 }
  0x26   :  { %v61_v19 = vrot.slane %v41_v16, %v47_v5  ;;  %v65_v20 = vrot.slane %v41_v16, %v51_v6 }
  0x28   :  { %v68_v21 = vadd.f32 %v61_v19, %v55_v17  ;;  %v69_v22 = vadd.f32 %v65_v20, %v56_v18 }
  0x2a   :  { %70 = vst [vmem:[#allocation5] sm:$0xff] %v68_v21  ;;  %71 = vst [vmem:[#allocation5 + $0x8] sm:$0xff] %v69_v22 }
  0x2b   :  { %124 = shalt.err (!%p121_p12)
}
  0x2c   :  { %s125_s13 = scalar_lea.hbm %s212_s5, 256 }
  0x2d   :  { %p126_p13 = scmp.ne.s32.totalorder %s212_s5, %s125_s13  ;;  %p129_p0 = scmp.lt.u32.totalorder %s125_s13, %s212_s5 }
  0x2f   :  { %p131_p1 = pnand %p129_p0, %p126_p13 }
  0x31   :  { %134 = shalt.err (!%p131_p1)
}
  0x32   :  { %81 = dma.vmem_to_hbm [thread:$0]  %s79_s4, 256, %s212_s5, [#allocation4]  }
  0x33   :  { %137 = dma.done.wait [#allocation4], 256  }
  0x34   :  { %138 = vsyncadd [#allocation4], 4294967040 }
  0x35   :  { %85 = vsyncpa [#allocation3], 1 }
  0x36   :  { %86 = vsyncpa [#allocation4], 1 }

</bundles_post_ra>
